<compile_context>
chip_gen: v6e
topology: v6e:2x2x1
jax: 0.10.0
libtpu: 0.0.40
codegen_flags: <defaults>
</compile_context>

<pallas_src>
import math
import functools

import jax
import jax.numpy as jnp
from jax.experimental import pallas as pl
from jax.experimental.pallas import tpu as pltpu


def _build_pe(d_model: int, max_len: int) -> jnp.ndarray:
    """Sinusoidal positional-encoding table, shape [max_len, 1, d_model] (PyTorch layout)."""
    position = jnp.arange(max_len, dtype=jnp.float32)[:, None]                  # [L, 1]
    div_term = jnp.exp(jnp.arange(0, d_model, 2, dtype=jnp.float32)
                       * (-math.log(10000.0) / d_model))                        # [D/2]
    pe = jnp.zeros((max_len, d_model), dtype=jnp.float32)
    pe = pe.at[:, 0::2].set(jnp.sin(position * div_term))
    pe = pe.at[:, 1::2].set(jnp.cos(position * div_term))
    return pe[:, None, :]                                                       # [L, 1, D]


def _pos_enc_kernel(seed_ref, x_ref, pe_ref, o_ref, *, p: float, training: bool):
    # x_ref/pe_ref/o_ref: (TS, B*D) lane-dense tiles.
    y = x_ref[...] + pe_ref[...]

    if training and p > 0.0:
        ts, w = y.shape
        # Counter-based hash PRNG (splitmix32-style finalizer) over the global
        # element index -> platform-independent, no TPU-only PRNG primitives.
        row = jax.lax.broadcasted_iota(jnp.int32, (ts, w), 0)
        col = jax.lax.broadcasted_iota(jnp.int32, (ts, w), 1)
        idx = (pl.program_id(0) * ts + row) * w + col        # wrap-around is fine
        z = idx.astype(jnp.uint32)
        z = z + seed_ref[0].astype(jnp.uint32) * jnp.uint32(0x9E3779B9)
        z = (z ^ (z >> 16)) * jnp.uint32(0x7FEB352D)
        z = (z ^ (z >> 15)) * jnp.uint32(0x846CA68B)
        z = z ^ (z >> 16)
        threshold = jnp.uint32(min(int(round(p * 2.0**32)), 2**32 - 1))
        keep = z >= threshold                                 # P(keep) = 1 - p
        scale = jnp.float32(1.0 / (1.0 - p))                  # inverted dropout
        y = jnp.where(keep, y * scale, jnp.zeros_like(y))

    o_ref[...] = y.astype(o_ref.dtype)


def positional_encoding(x, pe, seed=0, *, p: float = 0.1, training: bool = False,
                        target_tile_bytes: int = 1 << 20):
    """x: [S, B, D], pe: [max_len, 1, D]  ->  dropout(x + pe[:S]) with shape [S, B, D]."""
    S, B, D = x.shape
    W = B * D

    # Lane-dense views: last dim is B*D (full-extent block dim, no 128-divisibility issue).
    x2 = x.reshape(S, W)
    pe2 = jnp.tile(pe[:S, 0, :].astype(x.dtype), (1, B))      # [S, W], pe2[s, b*D+d] = pe[s, d]

    # Tile rows so each tile is ~target_tile_bytes (double-buffered x/pe/out fit
    # comfortably in the default scoped VMEM on v5e/v6e/v7x).
    row_bytes = W * x2.dtype.itemsize
    rows_per_tile = max(1, target_tile_bytes // row_bytes)
    if rows_per_tile >= S:
        TS = S                                                # single / full-extent blocks
    else:
        TS = max(8, (rows_per_tile // 8) * 8)                 # sublane-aligned
        if TS >= S:
            TS = S
    grid = (pl.cdiv(S, TS),)

    seed_arr = jnp.asarray([seed], dtype=jnp.int32)
    kernel = functools.partial(_pos_enc_kernel, p=float(p), training=bool(training))

    out2 = pl.pallas_call(
        kernel,
        out_shape=jax.ShapeDtypeStruct((S, W), x.dtype),
        grid=grid,
        in_specs=[
            pl.BlockSpec(memory_space=pltpu.MemorySpace.SMEM),   # seed scalar
            pl.BlockSpec((TS, W), lambda i: (i, 0)),             # x slab tile
            pl.BlockSpec((TS, W), lambda i: (i, 0)),             # pre-broadcast PE tile
        ],
        out_specs=pl.BlockSpec((TS, W), lambda i: (i, 0)),
        compiler_params=pltpu.CompilerParams(
            dimension_semantics=("parallel",)),                  # no reduction -> megacore-friendly
    )(seed_arr, x2, pe2)

    return out2.reshape(S, B, D)


if __name__ == "__main__":
    # Small shapes consistent with the module's forward: [seq=8, batch=2, d_model=32]
    S, B, D = 8, 2, 32
    MAX_LEN = 64
    P = 0.1

    key = jax.random.PRNGKey(0)
    x = jax.random.normal(key, (S, B, D), dtype=jnp.float32)
    pe = _build_pe(D, MAX_LEN)

    # Eval-mode forward (dropout is identity, matching nn.Dropout in eval()).
    out = positional_encoding(x, pe, seed=0, p=P, training=False)
    out = jax.block_until_ready(out)

    ref = x + pe[:S]
    assert out.shape == (S, B, D)
    assert jnp.allclose(out, ref, atol=1e-6), "eval-mode mismatch vs reference"

    # Training-mode forward exercises the in-kernel dropout path.
    out_train = positional_encoding(x, pe, seed=123, p=P, training=True)
    out_train = jax.block_until_ready(out_train)
    assert out_train.shape == (S, B, D)

    # Every element must be either dropped (0) or kept and scaled by 1/(1-p).
    scaled_ref = ref * (1.0 / (1.0 - P))
    elem_ok = jnp.isclose(out_train, 0.0, atol=1e-8) | jnp.isclose(out_train, scaled_ref, atol=1e-5)
    assert bool(jnp.all(elem_ok)), "training-mode values not consistent with inverted dropout"
    n_zero = int(jnp.sum(out_train == 0.0))
    assert 0 < n_zero < (S * B * D) // 2, "dropout rate looks wrong"

    print("KERNEL_OK")
</pallas_src>

<mosaic_0001>
module attributes {stable_mosaic.version = 11 : i64} {
  func.func @_pos_enc_kernel(%arg0: i32, %arg1: memref<1xi32, #tpu.memory_space<smem>>, %arg2: memref<8x64xf32, #tpu.memory_space<vmem>>, %arg3: memref<8x64xf32, #tpu.memory_space<vmem>>, %arg4: memref<8x64xf32, #tpu.memory_space<vmem>>) attributes {dimension_semantics = [#tpu.dimension_semantics<parallel>], iteration_bounds = array<i64: 1>, scalar_prefetch = 0 : i64, scratch_operands = 0 : i64, tpu.core_type = #tpu.core_type<tc>, window_params = [{transform_indices = @transform_0, window_bounds = array<i64: 1>}, {transform_indices = @transform_1, window_bounds = array<i64: 8, 64>}, {transform_indices = @transform_2, window_bounds = array<i64: 8, 64>}, {transform_indices = @transform_3, window_bounds = array<i64: 8, 64>}]} {
    %c0 = arith.constant 0 : index
    %c0_0 = arith.constant 0 : index
    %0 = vector.load %arg2[%c0, %c0_0] : memref<8x64xf32, #tpu.memory_space<vmem>>, vector<8x64xf32>
    %c0_1 = arith.constant 0 : index
    %c0_2 = arith.constant 0 : index
    %1 = vector.load %arg3[%c0_1, %c0_2] : memref<8x64xf32, #tpu.memory_space<vmem>>, vector<8x64xf32>
    %2 = arith.addf %0, %1 : vector<8x64xf32>
    %c0_3 = arith.constant 0 : index
    %c0_4 = arith.constant 0 : index
    %3 = vector.load %arg4[%c0_3, %c0_4] : memref<8x64xf32, #tpu.memory_space<vmem>>, vector<8x64xf32>
    tpu.vector_store %arg4[%c0_3, %c0_4], %2 {strides = array<i32>} : memref<8x64xf32, #tpu.memory_space<vmem>>, vector<8x64xf32>,
    return
  }
  func.func @transform_0(%arg0: i32) -> i32 {
    %c0_i32 = arith.constant 0 : i32
    %c0_i32_0 = arith.constant 0 : i32
    return %c0_i32 : i32
  }
  func.func @transform_1(%arg0: i32) -> (i32, i32) {
    %c0_i32 = arith.constant 0 : i32
    %c0_i32_0 = arith.constant 0 : i32
    return %arg0, %c0_i32 : i32, i32
  }
  func.func @transform_2(%arg0: i32) -> (i32, i32) {
    %c0_i32 = arith.constant 0 : i32
    %c0_i32_0 = arith.constant 0 : i32
    return %arg0, %c0_i32 : i32, i32
  }
  func.func @transform_3(%arg0: i32) -> (i32, i32) {
    %c0_i32 = arith.constant 0 : i32
    %c0_i32_0 = arith.constant 0 : i32
    return %arg0, %c0_i32 : i32, i32
  }
}

</mosaic_0001>

<bundles_post_ra>
// kernel: tpu_custom_call.1
= control target key start
LH: loop header
LB: loop body
LE: loop exit
PB: predicated region body
PF: predicated region fallthrough
CT: control target
= control target key end

     0   :  { %9 = vsyncpa [#allocation4], 0  ;;  %s162_s0 = inlined_call_operand.<no memory space> [shape: s32[1], index: 0, kind: input, shape index: {}]   ;;  %s163_s1 = inlined_call_operand.hbm [shape: f32[8,64], index: 1, kind: input, shape index: {}]   ;;  %s164_s2 = inlined_call_operand.hbm [shape: f32[8,64], index: 2, kind: input, shape index: {}]   ;;  %s165_s3 = inlined_call_operand.hbm [shape: f32[8,64], index: 3, kind: output, shape index: {}]  }
   0x1   :  { %10 = vsyncpa [#allocation7], 0 }
   0x2   :  { %11 = vsyncpa [#allocation5], 0  ;;  %s130_s12 = smov [#allocation3]   ;;  %s131_s14 = smov [#allocation6]  }
   0x3   :  { %s20_s13 = sshll.u32 %s130_s12, 4  ;;  %s30_s15 = sshll.u32 %s131_s14, 4  ;;  %s21_s13 = int_to_ptr.vmem [resolvable:$true] %s20_s13  ;;  %s31_s15 = int_to_ptr.vmem [resolvable:$true] %s30_s15 }
   0x4   :  { %s72_s16 = scalar_lea.vmem %s21_s13, 128  ;;  %p77_p1 = scmp.lt.s32.totalorder %s21_s13, %s21_s13 }
   0x5   :  { %p73_p0 = scmp.ne.s32.totalorder %s21_s13, %s72_s16  ;;  %p78_p2 = scmp.lt.s32.totalorder %s72_s16, %s72_s16 }
   0x7   :  { %p79_p3 = por %p78_p2, %p77_p1 }
   0x9   :  { %p80_p4 = pnand %p79_p3, %p73_p0 }
   0xb   :  { %83 = shalt.err (!%p80_p4)
}
   0xc   :  { %23 = dma.hbm_to_vmem [thread:$0]  %s163_s1, 128, %s21_s13, [#allocation4]  }
   0xd   :  { %s92_s18 = scalar_lea.vmem %s31_s15, 128  ;;  %p97_p6 = scmp.lt.s32.totalorder %s31_s15, %s31_s15 }
   0xe   :  { %p93_p5 = scmp.ne.s32.totalorder %s31_s15, %s92_s18  ;;  %p98_p7 = scmp.lt.s32.totalorder %s92_s18, %s92_s18 }
  0x10   :  { %p99_p8 = por %p98_p7, %p97_p6 }
  0x12   :  { %p100_p9 = pnand %p99_p8, %p93_p5 }
  0x14   :  { %103 = shalt.err (!%p100_p9)
}
  0x15   :  { %33 = dma.hbm_to_vmem [thread:$0]  %s164_s2, 128, %s31_s15, [#allocation7]  }
  0x16   :  { %124 = dma.done.wait [#allocation4], 128  }
  0x17   :  { %125 = vsyncadd [#allocation4], 4294967168 }
  0x18   :  { %126 = dma.done.wait [#allocation7], 128  }
  0x19   :  { %127 = vsyncadd [#allocation7], 4294967168  ;;  %s132_s21 = smov [#allocation8]   ;;  %v40_v0 = vld [vmem:[#allocation3] sm:$0xff]  ;;  %v41_v1 = vld [vmem:[#allocation6] sm:$0xff]  ;;  %vm43_vm0 = vcmask 523264  }
  0x1a   :  { %s51_s22 = sshll.u32 %s132_s21, 4  ;;  %v42_v2 = vadd.f32 %v41_v1, %v40_v0  ;;  %s52_s22 = int_to_ptr.vmem [resolvable:$true] %s51_s22 }
  0x1b   :  { %s104_s1 = scalar_lea.vmem %s52_s22, 128  ;;  %p109_p11 = scmp.lt.s32.totalorder %s52_s22, %s52_s22 }
  0x1c   :  { %44 = vst.msk [vmem:[#allocation8] sm:$0xff] %vm43_vm0, %v42_v2  ;;  %p105_p10 = scmp.ne.s32.totalorder %s52_s22, %s104_s1  ;;  %p110_p12 = scmp.lt.s32.totalorder %s104_s1, %s104_s1 }
  0x1e   :  { %p111_p13 = por %p110_p12, %p109_p11 }
  0x20   :  { %p112_p0 = pnand %p111_p13, %p105_p10 }
  0x22   :  { %115 = shalt.err (!%p112_p0)
}
  0x23   :  { %54 = dma.vmem_to_hbm [thread:$0]  %s52_s22, 128, %s165_s3, [#allocation5]  }
  0x24   :  { %128 = dma.done.wait [#allocation5], 128  }
  0x25   :  { %129 = vsyncadd [#allocation5], 4294967168 }
  0x26   :  { %58 = vsyncpa [#allocation4], 1 }
  0x27   :  { %59 = vsyncpa [#allocation7], 1 }
  0x28   :  { %60 = vsyncpa [#allocation5], 1 }

</bundles_post_ra>
